<compile_context>
chip_gen: v5e
topology: v5e:2x2
jax: 0.10.0
libtpu: 0.0.40
codegen_flags: <defaults>
</compile_context>

<pallas_src>
import jax
import jax.numpy as jnp
from jax.experimental import pallas as pl
from jax.experimental.pallas import tpu as pltpu


_MAX_DMA_CHUNKS = 4  # a few concurrent DMAs keeps multiple DMA engines busy


def _make_copy_kernel(n_chunks: int, chunk_rows: int, last_rows: int):
    """Kernel: direct HBM->HBM copy of a 2-D array via `n_chunks` concurrent
    DMAs split along the leading (batch) axis.  No VMEM staging, no grid."""

    def kernel(src_ref, dst_ref, sems):
        copies = []
        for c in range(n_chunks):
            rows = chunk_rows if c < n_chunks - 1 else last_rows
            start = c * chunk_rows
            cp = pltpu.make_async_copy(
                src_ref.at[pl.ds(start, rows), :],
                dst_ref.at[pl.ds(start, rows), :],
                sems.at[c],
            )
            cp.start()
            copies.append(cp)
        for cp in copies:
            cp.wait()

    return kernel


def encoder_forward(
    src_tokens: jax.Array,
    src_lengths: jax.Array,
    *,
    materialize_copy: bool = False,
) -> jax.Array:
    """Mirror of EncoderModel.forward(src_tokens, src_lengths).

    src_tokens:  (batch, max_seq_len) int32
    src_lengths: (batch,) int32 -- accepted (as in the reference signature)
                 but unused, since the reference forward body performs no
                 compute.

    By default this is a zero-cost pass-through (no kernel launch, no HBM
    traffic).  With materialize_copy=True the result is materialized into a
    fresh buffer via direct HBM->HBM DMA inside a Pallas kernel.
    """
    del src_lengths  # unused: reference forward has no body

    if not materialize_copy:
        # Fastest possible "implementation" of a pass-through forward: the
        # op is free under jit on every TPU generation.
        return src_tokens

    batch, _ = src_tokens.shape

    # Split the copy along the batch axis into a few big contiguous chunks so
    # multiple DMA engines can run concurrently.  Everything below is static.
    n_chunks = max(1, min(_MAX_DMA_CHUNKS, batch))
    chunk_rows = -(-batch // n_chunks)            # ceil div
    n_chunks = -(-batch // chunk_rows)            # recompute after rounding
    last_rows = batch - (n_chunks - 1) * chunk_rows

    return pl.pallas_call(
        _make_copy_kernel(n_chunks, chunk_rows, last_rows),
        out_shape=jax.ShapeDtypeStruct(src_tokens.shape, src_tokens.dtype),
        in_specs=[pl.BlockSpec(memory_space=pl.ANY)],
        out_specs=pl.BlockSpec(memory_space=pl.ANY),
        scratch_shapes=[pltpu.SemaphoreType.DMA((n_chunks,))],
    )(src_tokens)


if __name__ == "__main__":
    key = jax.random.PRNGKey(0)
    k1, k2 = jax.random.split(key)

    # Module-faithful small shapes: batch=2, max_seq_len=8.
    batch, max_seq_len, vocab = 2, 8, 32
    src_tokens = jax.random.randint(
        k1, (batch, max_seq_len), minval=0, maxval=vocab, dtype=jnp.int32
    )
    # src_lengths sorted descending with src_lengths[0] == max_seq_len,
    # per the reference docstring.
    src_lengths = jnp.array([max_seq_len, max_seq_len - 2], dtype=jnp.int32)

    # Default path: zero-cost pass-through (no kernel launch).
    out_fast = jax.block_until_ready(encoder_forward(src_tokens, src_lengths))
    assert out_fast.shape == src_tokens.shape and out_fast.dtype == src_tokens.dtype
    assert bool(jnp.all(out_fast == src_tokens))

    # Materialized-copy path: runs the Pallas HBM->HBM DMA kernel once.
    out_copy = jax.block_until_ready(
        encoder_forward(src_tokens, src_lengths, materialize_copy=True)
    )
    assert out_copy.shape == src_tokens.shape and out_copy.dtype == src_tokens.dtype
    assert bool(jnp.all(out_copy == src_tokens))

    # Exercise the multi-chunk DMA path with an unaligned shape (no (8,128)
    # constraint applies since the copy never stages through VMEM BlockSpecs).
    b2, s2 = 10, 300
    toks2 = jax.random.randint(k2, (b2, s2), minval=0, maxval=vocab, dtype=jnp.int32)
    lens2 = jnp.full((b2,), s2, dtype=jnp.int32)
    out2 = jax.block_until_ready(
        encoder_forward(toks2, lens2, materialize_copy=True)
    )
    assert out2.shape == toks2.shape and out2.dtype == toks2.dtype
    assert bool(jnp.all(out2 == toks2))

    print("KERNEL_OK")
</pallas_src>

<mosaic_0001>
module attributes {stable_mosaic.version = 11 : i64} {
  func.func @kernel(%arg0: memref<2x8xi32, #tpu.memory_space<any>>, %arg1: memref<2x8xi32, #tpu.memory_space<any>>, %arg2: memref<2x!tpu.dma_semaphore, #tpu.memory_space<semaphore_mem>>) attributes {dimension_semantics = [], scalar_prefetch = 0 : i64, scratch_operands = 1 : i64, tpu.core_type = #tpu.core_type<tc>} {
    %c0_i32 = arith.constant 0 : i32
    %c0_i32_0 = arith.constant 0 : i32
    %c0_i32_1 = arith.constant 0 : i32
    %0 = tpu.memref_slice %arg0[%c0_i32_0, %c0_i32_1] : memref<2x8xi32, #tpu.memory_space<any>> -> memref<1x8xi32, #tpu.memory_space<any>>
    %c0_i32_2 = arith.constant 0 : i32
    %c0_i32_3 = arith.constant 0 : i32
    %1 = tpu.memref_slice %arg1[%c0_i32_2, %c0_i32_3] : memref<2x8xi32, #tpu.memory_space<any>> -> memref<1x8xi32, #tpu.memory_space<any>>
    %2 = tpu.memref_slice %arg2[%c0_i32] : memref<2x!tpu.dma_semaphore, #tpu.memory_space<semaphore_mem>> -> memref<1x!tpu.dma_semaphore, #tpu.memory_space<semaphore_mem>>
    %3 = tpu.memref_squeeze %2 : memref<1x!tpu.dma_semaphore, #tpu.memory_space<semaphore_mem>> -> memref<!tpu.dma_semaphore, #tpu.memory_space<semaphore_mem>>
    tpu.enqueue_dma source(%0 : memref<1x8xi32, #tpu.memory_space<any>>) target(%1 : memref<1x8xi32, #tpu.memory_space<any>>) target_semaphore(%3 : memref<!tpu.dma_semaphore, #tpu.memory_space<semaphore_mem>>)
    %c1_i32 = arith.constant 1 : i32
    %c1_i32_4 = arith.constant 1 : i32
    %c0_i32_5 = arith.constant 0 : i32
    %4 = tpu.memref_slice %arg0[%c1_i32_4, %c0_i32_5] : memref<2x8xi32, #tpu.memory_space<any>> -> memref<1x8xi32, #tpu.memory_space<any>>
    %c1_i32_6 = arith.constant 1 : i32
    %c0_i32_7 = arith.constant 0 : i32
    %5 = tpu.memref_slice %arg1[%c1_i32_6, %c0_i32_7] : memref<2x8xi32, #tpu.memory_space<any>> -> memref<1x8xi32, #tpu.memory_space<any>>
    %6 = tpu.memref_slice %arg2[%c1_i32] : memref<2x!tpu.dma_semaphore, #tpu.memory_space<semaphore_mem>> -> memref<1x!tpu.dma_semaphore, #tpu.memory_space<semaphore_mem>>
    %7 = tpu.memref_squeeze %6 : memref<1x!tpu.dma_semaphore, #tpu.memory_space<semaphore_mem>> -> memref<!tpu.dma_semaphore, #tpu.memory_space<semaphore_mem>>
    tpu.enqueue_dma source(%4 : memref<1x8xi32, #tpu.memory_space<any>>) target(%5 : memref<1x8xi32, #tpu.memory_space<any>>) target_semaphore(%7 : memref<!tpu.dma_semaphore, #tpu.memory_space<semaphore_mem>>)
    %c0_i32_8 = arith.constant 0 : i32
    %c0_i32_9 = arith.constant 0 : i32
    %c0_i32_10 = arith.constant 0 : i32
    %8 = tpu.memref_slice %arg0[%c0_i32_9, %c0_i32_10] : memref<2x8xi32, #tpu.memory_space<any>> -> memref<1x8xi32, #tpu.memory_space<any>>
    %c0_i32_11 = arith.constant 0 : i32
    %c0_i32_12 = arith.constant 0 : i32
    %9 = tpu.memref_slice %arg1[%c0_i32_11, %c0_i32_12] : memref<2x8xi32, #tpu.memory_space<any>> -> memref<1x8xi32, #tpu.memory_space<any>>
    %10 = tpu.memref_slice %arg2[%c0_i32_8] : memref<2x!tpu.dma_semaphore, #tpu.memory_space<semaphore_mem>> -> memref<1x!tpu.dma_semaphore, #tpu.memory_space<semaphore_mem>>
    %11 = tpu.memref_squeeze %10 : memref<1x!tpu.dma_semaphore, #tpu.memory_space<semaphore_mem>> -> memref<!tpu.dma_semaphore, #tpu.memory_space<semaphore_mem>>
    tpu.wait_dma2 semaphore(%11 : memref<!tpu.dma_semaphore, #tpu.memory_space<semaphore_mem>>) src(%8 : memref<1x8xi32, #tpu.memory_space<any>>) dst(%9 : memref<1x8xi32, #tpu.memory_space<any>>)
    %c1_i32_13 = arith.constant 1 : i32
    %c1_i32_14 = arith.constant 1 : i32
    %c0_i32_15 = arith.constant 0 : i32
    %12 = tpu.memref_slice %arg0[%c1_i32_14, %c0_i32_15] : memref<2x8xi32, #tpu.memory_space<any>> -> memref<1x8xi32, #tpu.memory_space<any>>
    %c1_i32_16 = arith.constant 1 : i32
    %c0_i32_17 = arith.constant 0 : i32
    %13 = tpu.memref_slice %arg1[%c1_i32_16, %c0_i32_17] : memref<2x8xi32, #tpu.memory_space<any>> -> memref<1x8xi32, #tpu.memory_space<any>>
    %14 = tpu.memref_slice %arg2[%c1_i32_13] : memref<2x!tpu.dma_semaphore, #tpu.memory_space<semaphore_mem>> -> memref<1x!tpu.dma_semaphore, #tpu.memory_space<semaphore_mem>>
    %15 = tpu.memref_squeeze %14 : memref<1x!tpu.dma_semaphore, #tpu.memory_space<semaphore_mem>> -> memref<!tpu.dma_semaphore, #tpu.memory_space<semaphore_mem>>
    tpu.wait_dma2 semaphore(%15 : memref<!tpu.dma_semaphore, #tpu.memory_space<semaphore_mem>>) src(%12 : memref<1x8xi32, #tpu.memory_space<any>>) dst(%13 : memref<1x8xi32, #tpu.memory_space<any>>)
    return
  }
}

</mosaic_0001>

<bundles_post_ra>
// kernel: tpu_custom_call.1
= control target key start
LH: loop header
LB: loop body
LE: loop exit
PB: predicated region body
PF: predicated region fallthrough
CT: control target
= control target key end

     0   :  { %s60_s15 = smov [#allocation2]   ;;  %s61_s16 = smov [#allocation3]   ;;  %s87_s0 = inlined_call_operand.hbm [shape: s32[2,8], index: 0, kind: input, shape index: {}]   ;;  %s88_s1 = inlined_call_operand.hbm [shape: s32[2,8], index: 1, kind: output, shape index: {}]  }
   0x1   :  { %s10_s8 = sshll.u32 %s87_s0, 4  ;;  %s12_s11 = sshll.u32 %s88_s1, 4  ;;  %s11_s8 = int_to_ptr.hbm [resolvable:$true] %s10_s8  ;;  %s13_s11 = int_to_ptr.hbm [resolvable:$true] %s12_s11 }
   0x2   :  { %s17_s14 = scalar_lea.hbm %s87_s0, 1  ;;  %s62_s17 = smov 0  }
   0x3   :  { %16 = dma.general %s11_s8, 16, %s13_s11, %s60_s15, %s61_s16, [#allocation4], %s62_s17, 0  }
   0x4   :  { %s18_s20 = scalar_lea.hbm %s88_s1, 1  ;;  %s24_s21 = sshll.u32 %s17_s14, 4  ;;  %s25_s21 = int_to_ptr.hbm [resolvable:$true] %s24_s21 }
   0x5   :  { %s26_s22 = sshll.u32 %s18_s20, 4  ;;  %s63_s23 = smov [#allocation2 + $0x1]   ;;  %s27_s22 = int_to_ptr.hbm [resolvable:$true] %s26_s22 }
   0x6   :  { %s64_s24 = smov [#allocation5]  }
   0x7   :  { %30 = dma.general %s25_s21, 16, %s27_s22, %s63_s23, %s64_s24, [#allocation6], %s62_s17, 0  }
   0x8   :  { %56 = dma.done.wait [#allocation2], 16 }
   0x9   :  { %57 = vsyncadd [#allocation2], 4294967280 }
   0xa   :  { %58 = dma.done.wait [#allocation2 + $0x1], 16 }
   0xb   :  { %59 = vsyncadd [#allocation2 + $0x1], 4294967280 }
   0xc   :  { %36 = vsyncmov [#allocation2] }
   0xf   :  { %s37_s0 = vpop.sfrf %36 }
  0x10   :  { %p49_p0 = scmp.ne.s32.totalorder %s37_s0, 0 }
  0x12   :  { %41 = shalt.err (%p49_p0)  }
  0x13   :  { %43 = vsyncmov [#allocation2 + $0x1] }
  0x16   :  { %s44_s25 = vpop.sfrf %43 }
  0x17   :  { %p50_p1 = scmp.ne.s32.totalorder %s44_s25, 0 }
  0x19   :  { %48 = shalt.err (%p50_p1)  }

</bundles_post_ra>
